<compile_context>
chip_gen: v7x
topology: tpu7x:2x2x1
jax: 0.10.0
libtpu: 0.0.40
codegen_flags: <defaults>
</compile_context>

<pallas_src>
import functools
import math

import jax
import jax.numpy as jnp
from jax.experimental import pallas as pl
from jax.experimental.pallas import tpu as pltpu


F_PAD = 128  # lane-dense feature width (one full vreg lane dim)


def _gcn_fused_kernel(a_ref, h_ref, *rest, num_layers):
    """All GCN layers fused; intermediates stay on-chip.

    a_ref : [N, N]      bf16   A_hat = diag(norm) @ A @ diag(norm)
    h_ref : [N, F_PAD]  bf16   zero-padded node features
    rest  : num_layers weight refs ([F_PAD, F_PAD] bf16) followed by the
            output ref ([N, F_PAD] f32).
    """
    w_refs = rest[:num_layers]
    o_ref = rest[num_layers]

    a = a_ref[...]                     # bf16, reused by every layer
    h = h_ref[...]                     # bf16
    for li in range(num_layers):
        # h @ W on the MXU (bf16 in, f32 accumulate)
        hw = jnp.dot(h, w_refs[li][...], preferred_element_type=jnp.float32)
        # neighborhood aggregation with the pre-folded symmetric norm
        agg = jnp.dot(a, hw.astype(jnp.bfloat16),
                      preferred_element_type=jnp.float32)
        if li < num_layers - 1:
            # ReLU in f32 (VPU), back to bf16 for the next MXU pass.
            h = jnp.maximum(agg, 0.0).astype(jnp.bfloat16)
        else:
            # last layer: activation=None, lane-dense f32 store
            o_ref[...] = agg.astype(o_ref.dtype)


def gcn_forward(a_hat_bf16, h_pad_bf16, weights_pad_bf16, n_classes):
    """Run the fused GCN kernel; returns [N, n_classes] float32."""
    n = a_hat_bf16.shape[0]
    num_layers = len(weights_pad_bf16)
    kernel = functools.partial(_gcn_fused_kernel, num_layers=num_layers)
    vmem_spec = pl.BlockSpec(memory_space=pltpu.MemorySpace.VMEM)
    out_pad = pl.pallas_call(
        kernel,
        out_shape=jax.ShapeDtypeStruct((n, F_PAD), jnp.float32),
        in_specs=[vmem_spec] * (2 + num_layers),
        out_specs=vmem_spec,
        compiler_params=pltpu.CompilerParams(
            vmem_limit_bytes=64 * 1024 * 1024),
    )(a_hat_bf16, h_pad_bf16, *weights_pad_bf16)
    return out_pad[:, :n_classes]


def init_gcn_params(key, in_feats, n_hidden, n_classes, n_layers):
    """Mirror GCN.__init__ / GCNLayer.reset_parameters (uniform +-1/sqrt(out))."""
    dims = [(in_feats, n_hidden)]
    dims += [(n_hidden, n_hidden) for _ in range(n_layers - 1)]
    dims += [(n_hidden, n_classes)]
    weights = []
    for (fi, fo) in dims:
        key, sub = jax.random.split(key)
        stdv = 1.0 / math.sqrt(fo)
        weights.append(
            jax.random.uniform(sub, (fi, fo), jnp.float32, -stdv, stdv))
    return weights


def _pad2d(x, rows, cols):
    r, c = x.shape
    return jnp.pad(x, ((0, rows - r), (0, cols - c)))


def _reference_f32(a, norm, features, weights):
    """Pure-f32 pure-JAX reference of the original formulation."""
    hp = jax.lax.Precision.HIGHEST
    h = features
    for li, w in enumerate(weights):
        h = jnp.dot(a, jnp.dot(h, w, precision=hp) * norm, precision=hp) * norm
        if li < len(weights) - 1:
            h = jnp.maximum(h, 0.0)
    return h


def _reference_bf16(a_hat_bf, h_bf, weights_bf):
    """Pure-JAX reference mirroring the kernel's bf16 casts (f32 accumulate)."""
    hp = jax.lax.Precision.HIGHEST
    a = a_hat_bf.astype(jnp.float32)
    h = h_bf
    nl = len(weights_bf)
    out = None
    for li, w in enumerate(weights_bf):
        hw = jnp.dot(h.astype(jnp.float32), w.astype(jnp.float32), precision=hp)
        agg = jnp.dot(a, hw.astype(jnp.bfloat16).astype(jnp.float32),
                      precision=hp)
        if li < nl - 1:
            h = jnp.maximum(agg, 0.0).astype(jnp.bfloat16)
        else:
            out = agg
    return out


if __name__ == "__main__":
    # Small synthetic graph / feature setup.
    N = 64          # number of nodes
    IN_FEATS = 16
    N_HIDDEN = 32
    N_CLASSES = 8
    N_LAYERS = 2    # -> 3 GCNLayers total (in->hid, hid->hid, hid->classes)

    key = jax.random.PRNGKey(0)
    k_feat, k_adj, k_param = jax.random.split(key, 3)

    # Node features.
    features = jax.random.normal(k_feat, (N, IN_FEATS), jnp.float32)

    # Deterministic random symmetric adjacency with self-loops.
    adj_bits = (jax.random.uniform(k_adj, (N, N)) < 0.1).astype(jnp.float32)
    a = jnp.maximum(adj_bits, adj_bits.T)
    a = jnp.maximum(a, jnp.eye(N, dtype=jnp.float32))   # self loops

    # Symmetric normalization 1/sqrt(deg), shape [N, 1].
    deg = jnp.sum(a, axis=1, keepdims=True)
    norm = 1.0 / jnp.sqrt(deg)

    # Parameters (deterministic, matches reset_parameters distribution).
    weights = init_gcn_params(k_param, IN_FEATS, N_HIDDEN, N_CLASSES, N_LAYERS)

    # ---- one-time host-side prep (amortized across all layers) ----
    # Fold symmetric normalization into the adjacency: A_hat = D^-1/2 A D^-1/2.
    a_hat_bf16 = ((norm * a) * norm.T).astype(jnp.bfloat16)
    # Zero-pad feature axes to 128 lanes and cast MXU operands to bf16.
    h_pad_bf16 = _pad2d(features, N, F_PAD).astype(jnp.bfloat16)
    weights_pad_bf16 = [
        _pad2d(w, F_PAD, F_PAD).astype(jnp.bfloat16) for w in weights]

    # Run the fused Pallas GCN.
    out = gcn_forward(a_hat_bf16, h_pad_bf16, weights_pad_bf16, N_CLASSES)
    out = jax.block_until_ready(out)
    assert out.shape == (N, N_CLASSES), out.shape

    # Check 1 (tight): pure-JAX reference using the same bf16 numerics.
    ref_bf16 = _reference_bf16(a_hat_bf16, h_pad_bf16,
                               weights_pad_bf16)[:, :N_CLASSES]
    assert jnp.allclose(out, ref_bf16, atol=1e-3, rtol=1e-3), \
        "mismatch vs bf16 reference"

    # Check 2 (loose, accounts for bf16 operand quantization): full-f32
    # reference of the original (A @ ((hW)*norm))*norm formulation.
    ref_f32 = _reference_f32(a, norm, features, weights)
    assert jnp.allclose(out, ref_f32, atol=5e-2, rtol=5e-2), \
        "mismatch vs f32 reference"

    print("KERNEL_OK")
</pallas_src>

<mosaic_0001>
module attributes {stable_mosaic.version = 11 : i64} {
  func.func @_gcn_fused_kernel(%arg0: memref<64x64xbf16, #tpu.memory_space<vmem>>, %arg1: memref<64x128xbf16, #tpu.memory_space<vmem>>, %arg2: memref<128x128xbf16, #tpu.memory_space<vmem>>, %arg3: memref<128x128xbf16, #tpu.memory_space<vmem>>, %arg4: memref<128x128xbf16, #tpu.memory_space<vmem>>, %arg5: memref<64x128xf32, #tpu.memory_space<vmem>>) attributes {dimension_semantics = [], scalar_prefetch = 0 : i64, scratch_operands = 0 : i64, tpu.core_type = #tpu.core_type<tc>} {
    %c0 = arith.constant 0 : index
    %c0_0 = arith.constant 0 : index
    %0 = vector.load %arg0[%c0, %c0_0] : memref<64x64xbf16, #tpu.memory_space<vmem>>, vector<64x64xbf16>
    %c0_1 = arith.constant 0 : index
    %c0_2 = arith.constant 0 : index
    %1 = vector.load %arg1[%c0_1, %c0_2] : memref<64x128xbf16, #tpu.memory_space<vmem>>, vector<64x128xbf16>
    %c0_3 = arith.constant 0 : index
    %c0_4 = arith.constant 0 : index
    %2 = vector.load %arg2[%c0_3, %c0_4] : memref<128x128xbf16, #tpu.memory_space<vmem>>, vector<128x128xbf16>
    %cst = arith.constant dense<0.000000e+00> : vector<64x128xf32>
    %3 = tpu.matmul %1, %2, %cst {dimension_numbers = #tpu.dot_dimension_numbers<[1], [0], [0], [1], [0, 0, 1, 1], [], []>} : vector<64x128xbf16>, vector<128x128xbf16>, vector<64x128xf32> -> vector<64x128xf32>
    %4 = arith.truncf %3 : vector<64x128xf32> to vector<64x128xbf16>
    %cst_5 = arith.constant dense<0.000000e+00> : vector<64x128xf32>
    %5 = tpu.matmul %0, %4, %cst_5 {dimension_numbers = #tpu.dot_dimension_numbers<[1], [0], [0], [1], [0, 0, 1, 1], [], []>} : vector<64x64xbf16>, vector<64x128xbf16>, vector<64x128xf32> -> vector<64x128xf32>
    %cst_6 = arith.constant 0.000000e+00 : f32
    %6 = vector.broadcast %cst_6 : f32 to vector<64x128xf32>
    %7 = arith.maximumf %5, %6 : vector<64x128xf32>
    %8 = arith.truncf %7 : vector<64x128xf32> to vector<64x128xbf16>
    %c0_7 = arith.constant 0 : index
    %c0_8 = arith.constant 0 : index
    %9 = vector.load %arg3[%c0_7, %c0_8] : memref<128x128xbf16, #tpu.memory_space<vmem>>, vector<128x128xbf16>
    %cst_9 = arith.constant dense<0.000000e+00> : vector<64x128xf32>
    %10 = tpu.matmul %8, %9, %cst_9 {dimension_numbers = #tpu.dot_dimension_numbers<[1], [0], [0], [1], [0, 0, 1, 1], [], []>} : vector<64x128xbf16>, vector<128x128xbf16>, vector<64x128xf32> -> vector<64x128xf32>
    %11 = arith.truncf %10 : vector<64x128xf32> to vector<64x128xbf16>
    %cst_10 = arith.constant dense<0.000000e+00> : vector<64x128xf32>
    %12 = tpu.matmul %0, %11, %cst_10 {dimension_numbers = #tpu.dot_dimension_numbers<[1], [0], [0], [1], [0, 0, 1, 1], [], []>} : vector<64x64xbf16>, vector<64x128xbf16>, vector<64x128xf32> -> vector<64x128xf32>
    %cst_11 = arith.constant 0.000000e+00 : f32
    %13 = vector.broadcast %cst_11 : f32 to vector<64x128xf32>
    %14 = arith.maximumf %12, %13 : vector<64x128xf32>
    %15 = arith.truncf %14 : vector<64x128xf32> to vector<64x128xbf16>
    %c0_12 = arith.constant 0 : index
    %c0_13 = arith.constant 0 : index
    %16 = vector.load %arg4[%c0_12, %c0_13] : memref<128x128xbf16, #tpu.memory_space<vmem>>, vector<128x128xbf16>
    %cst_14 = arith.constant dense<0.000000e+00> : vector<64x128xf32>
    %17 = tpu.matmul %15, %16, %cst_14 {dimension_numbers = #tpu.dot_dimension_numbers<[1], [0], [0], [1], [0, 0, 1, 1], [], []>} : vector<64x128xbf16>, vector<128x128xbf16>, vector<64x128xf32> -> vector<64x128xf32>
    %18 = arith.truncf %17 : vector<64x128xf32> to vector<64x128xbf16>
    %cst_15 = arith.constant dense<0.000000e+00> : vector<64x128xf32>
    %19 = tpu.matmul %0, %18, %cst_15 {dimension_numbers = #tpu.dot_dimension_numbers<[1], [0], [0], [1], [0, 0, 1, 1], [], []>} : vector<64x64xbf16>, vector<64x128xbf16>, vector<64x128xf32> -> vector<64x128xf32>
    %c0_16 = arith.constant 0 : index
    %c0_17 = arith.constant 0 : index
    %20 = vector.load %arg5[%c0_16, %c0_17] : memref<64x128xf32, #tpu.memory_space<vmem>>, vector<64x128xf32>
    tpu.vector_store %arg5[%c0_16, %c0_17], %19 {strides = array<i32>} : memref<64x128xf32, #tpu.memory_space<vmem>>, vector<64x128xf32>,
    return
  }
}

</mosaic_0001>

<bundles_post_ra>
// kernel: tpu_custom_call.1
= control target key start
LH: loop header
LB: loop body
LE: loop exit
PB: predicated region body
PF: predicated region fallthrough
CT: control target
= control target key end

     0   :  { %10 = vsyncpa [#allocation3], 0  ;;  %s1387_s0 = inlined_call_operand.hbm [shape: bf16[64,64], index: 0, kind: input, shape index: {}]   ;;  %s1388_s1 = inlined_call_operand.hbm [shape: bf16[64,128], index: 1, kind: input, shape index: {}]   ;;  %s1389_s2 = inlined_call_operand.hbm [shape: bf16[128,128], index: 2, kind: input, shape index: {}]   ;;  %s1390_s3 = inlined_call_operand.hbm [shape: bf16[128,128], index: 3, kind: input, shape index: {}]   ;;  %s1391_s4 = inlined_call_operand.hbm [shape: bf16[128,128], index: 4, kind: input, shape index: {}]   ;;  %s1392_s5 = inlined_call_operand.hbm [shape: f32[64,128], index: 5, kind: output, shape index: {}]  }
   0x1   :  { %11 = vsyncpa [#allocation6], 0 }
   0x2   :  { %12 = vsyncpa [#allocation9], 0 }
   0x3   :  { %13 = vsyncpa [#allocation4], 0  ;;  %s1214_s18 = smov [#allocation5]   ;;  %s1215_s20 = smov [#allocation8]  }
   0x4   :  { %s31_s19 = sshll.u32 %s1214_s18, 4  ;;  %s55_s21 = sshll.u32 %s1215_s20, 4  ;;  %s32_s19 = int_to_ptr.vmem [resolvable:$true] %s31_s19  ;;  %s1254_s21 = int_to_ptr.vmem [resolvable:$true] %s55_s21 }
   0x5   :  { %s1074_s24 = scalar_lea.hbm %s1388_s1, 512 }
   0x6   :  { %p1075_p0 = scmp.ne.s32.totalorder %s1388_s1, %s1074_s24  ;;  %p1078_p1 = scmp.lt.u32.totalorder %s1074_s24, %s1388_s1 }
   0x8   :  { %p1080_p2 = pnand %p1078_p1, %p1075_p0 }
   0xa   :  { %1083 = shalt.err (!%p1080_p2)
}
   0xb   :  { %s1084_s29 = scalar_lea.vmem %s32_s19, 512  ;;  %p1089_p4 = scmp.lt.s32.totalorder %s32_s19, %s32_s19 }
   0xc   :  { %p1085_p3 = scmp.ne.s32.totalorder %s32_s19, %s1084_s29  ;;  %p1090_p5 = scmp.lt.s32.totalorder %s1084_s29, %s1084_s29 }
   0xe   :  { %p1091_p6 = por %p1090_p5, %p1089_p4 }
  0x10   :  { %p1092_p7 = pnand %p1091_p6, %p1085_p3 }
  0x12   :  { %1095 = shalt.err (!%p1092_p7)
}
  0x13   :  { %s1216_s30 = smov 64   ;;  %s1217_s6 = smov 4  }
  0x14   :  { %37 = dma.hbm_to_vmem [thread:$0]  %s1388_s1, 512, %s32_s19, [#allocation6], %s1216_s30, %s1216_s30, %s1217_s6  }
  0x15   :  { %s1096_s11 = scalar_lea.hbm %s1390_s3, 1024 }
  0x16   :  { %p1097_p8 = scmp.ne.s32.totalorder %s1390_s3, %s1096_s11  ;;  %p1100_p9 = scmp.lt.u32.totalorder %s1096_s11, %s1390_s3 }
  0x18   :  { %p1102_p10 = pnand %p1100_p9, %p1097_p8 }
  0x1a   :  { %1105 = shalt.err (!%p1102_p10)
}
  0x1b   :  { %s1106_s16 = scalar_lea.vmem %s1254_s21, 1024  ;;  %p1111_p12 = scmp.lt.s32.totalorder %s1254_s21, %s1254_s21 }
  0x1c   :  { %p1107_p11 = scmp.ne.s32.totalorder %s1254_s21, %s1106_s16  ;;  %p1112_p13 = scmp.lt.s32.totalorder %s1106_s16, %s1106_s16 }
  0x1e   :  { %p1113_p0 = por %p1112_p13, %p1111_p12 }
  0x20   :  { %p1114_p1 = pnand %p1113_p0, %p1107_p11 }
  0x22   :  { %1117 = shalt.err (!%p1114_p1)
}
  0x23   :  { %61 = dma.hbm_to_vmem [thread:$0]  %s1390_s3, 1024, %s1254_s21, [#allocation9], %s1216_s30, %s1216_s30, %s1217_s6  }
  0x24   :  { %s1218_s18 = smov [#allocation2]   ;;  %s1219_s20 = smov [#allocation7]  }
  0x25   :  { %s19_s19 = sshll.u32 %s1218_s18, 4  ;;  %s43_s22 = sshll.u32 %s1219_s20, 4  ;;  %s20_s19 = int_to_ptr.vmem [resolvable:$true] %s19_s19  ;;  %s1291_s22 = int_to_ptr.vmem [resolvable:$true] %s43_s22 }
  0x26   :  { %s1118_s25 = scalar_lea.hbm %s1387_s0, 512 }
  0x27   :  { %p1119_p2 = scmp.ne.s32.totalorder %s1387_s0, %s1118_s25  ;;  %p1122_p3 = scmp.lt.u32.totalorder %s1118_s25, %s1387_s0 }
  0x29   :  { %p1124_p4 = pnand %p1122_p3, %p1119_p2 }
  0x2b   :  { %1127 = shalt.err (!%p1124_p4)
}
  0x2c   :  { %s1128_s3 = scalar_lea.vmem %s20_s19, 512  ;;  %p1133_p6 = scmp.lt.s32.totalorder %s20_s19, %s20_s19 }
  0x2d   :  { %p1129_p5 = scmp.ne.s32.totalorder %s20_s19, %s1128_s3  ;;  %p1134_p7 = scmp.lt.s32.totalorder %s1128_s3, %s1128_s3 }
  0x2f   :  { %p1135_p8 = por %p1134_p7, %p1133_p6 }
  0x31   :  { %p1136_p9 = pnand %p1135_p8, %p1129_p5 }
  0x33   :  { %1139 = shalt.err (!%p1136_p9)
}
  0x34   :  { %25 = dma.hbm_to_vmem [thread:$0]  %s1387_s0, 512, %s20_s19, [#allocation3], %s1216_s30, %s1216_s30, %s1217_s6  }
  0x35   :  { %s1140_s10 = scalar_lea.hbm %s1389_s2, 1024 }
  0x36   :  { %p1141_p10 = scmp.ne.s32.totalorder %s1389_s2, %s1140_s10  ;;  %p1144_p11 = scmp.lt.u32.totalorder %s1140_s10, %s1389_s2 }
  0x38   :  { %p1146_p12 = pnand %p1144_p11, %p1141_p10 }
  0x3a   :  { %1149 = shalt.err (!%p1146_p12)
}
  0x3b   :  { %s1150_s15 = scalar_lea.vmem %s1291_s22, 1024  ;;  %p1155_p0 = scmp.lt.s32.totalorder %s1291_s22, %s1291_s22 }
  0x3c   :  { %p1151_p13 = scmp.ne.s32.totalorder %s1291_s22, %s1150_s15  ;;  %p1156_p1 = scmp.lt.s32.totalorder %s1150_s15, %s1150_s15 }
  0x3e   :  { %p1157_p2 = por %p1156_p1, %p1155_p0 }
  0x40   :  { %p1158_p3 = pnand %p1157_p2, %p1151_p13 }
  0x42   :  { %1161 = shalt.err (!%p1158_p3)
}
  0x43   :  { %49 = dma.hbm_to_vmem [thread:$0]  %s1389_s2, 1024, %s1291_s22, [#allocation6], %s1216_s30, %s1216_s30, %s1217_s6  }
  0x44   :  { %s1220_s1 = smov [#allocation10]   ;;  %s1162_s20 = scalar_lea.hbm %s1391_s4, 1024 }
  0x45   :  { %s67_s17 = sshll.u32 %s1220_s1, 4  ;;  %p1163_p4 = scmp.ne.s32.totalorder %s1391_s4, %s1162_s20  ;;  %s68_s17 = int_to_ptr.vmem [resolvable:$true] %s67_s17 }
  0x46   :  { %p1166_p5 = scmp.lt.u32.totalorder %s1162_s20, %s1391_s4 }
  0x48   :  { %p1168_p6 = pnand %p1166_p5, %p1163_p4 }
  0x4a   :  { %1171 = shalt.err (!%p1168_p6)
}
  0x4b   :  { %s1172_s27 = scalar_lea.vmem %s68_s17, 1024  ;;  %p1177_p8 = scmp.lt.s32.totalorder %s68_s17, %s68_s17 }
  0x4c   :  { %p1173_p7 = scmp.ne.s32.totalorder %s68_s17, %s1172_s27  ;;  %p1178_p9 = scmp.lt.s32.totalorder %s1172_s27, %s1172_s27 }
  0x4e   :  { %p1179_p10 = por %p1178_p9, %p1177_p8 }
  0x50   :  { %p1180_p11 = pnand %p1179_p10, %p1173_p7 }
  0x52   :  { %1183 = shalt.err (!%p1180_p11)
}
  0x53   :  { %73 = dma.hbm_to_vmem [thread:$0]  %s1391_s4, 1024, %s68_s17, [#allocation9], %s1216_s30, %s1216_s30, %s1217_s6  }
  0x54   :  { %1206 = dma.done.wait [#allocation3], 512  }
  0x55   :  { %1207 = vsyncadd [#allocation3], 4294966784 }
  0x56   :  { %1208 = dma.done.wait [#allocation6], 1536  }
  0x57   :  { %1209 = vsyncadd [#allocation6], 4294965760 }
  0x58   :  { %1210 = dma.done.wait [#allocation9], 2048  }
  0x59   :  { %1211 = vsyncadd [#allocation9], 4294965248  ;;  %v1042_v0 = vld [vmem:[#allocation7] sm:$0xff]   ;;  %v1043_v1 = vld [vmem:[#allocation7 + $0x8] sm:$0xff]   ;;  %vm283_vm0 = vcmask 523264   ;;  %s1221_s4 = smov [#allocation11]  }
  0x5a   :  { %912 = vmatprep.subr.bf16.mxu0 %v1042_v0  ;;  %v1044_v2 = vld [vmem:[#allocation7 + $0x10] sm:$0xff]   ;;  %v1045_v3 = vld [vmem:[#allocation7 + $0x18] sm:$0xff]   ;;  %v1050_v4 = vld [vmem:[#allocation5] sm:$0xff]   ;;  %s794_s30 = sshll.u32 %s1221_s4, 4  ;;  %s795_s30 = int_to_ptr.vmem [resolvable:$true] %s794_s30 }
  0x5b   :  { %913 = vmatpush3.bf16.msra.mxu0 %v1042_v0  ;;  %928 = vmatprep.mubr.bf16.mxu0 %v1050_v4  ;;  %v1046_v5 = vld [vmem:[#allocation7 + $0x20] sm:$0xff]   ;;  %v1047_v6 = vld [vmem:[#allocation7 + $0x28] sm:$0xff]   ;;  %v1048_v7 = vld [vmem:[#allocation7 + $0x30] sm:$0xff]   ;;  %s1184_s6 = scalar_lea.vmem %s795_s30, 1024  ;;  %p1189_p13 = scmp.lt.s32.totalorder %s795_s30, %s795_s30 }
  0x5c   :  { %914 = vmatprep.subr.bf16.mxu0 %v1043_v1  ;;  %v1049_v8 = vld [vmem:[#allocation7 + $0x38] sm:$0xff]   ;;  %v1051_v9 = vld [vmem:[#allocation5 + $0x8] sm:$0xff]   ;;  %v1052_v10 = vld [vmem:[#allocation5 + $0x10] sm:$0xff]   ;;  %p1185_p12 = scmp.ne.s32.totalorder %s795_s30, %s1184_s6  ;;  %p1190_p0 = scmp.lt.s32.totalorder %s1184_s6, %s1184_s6 }
  0x5d   :  { %v1053_v11 = vld [vmem:[#allocation5 + $0x18] sm:$0xff]   ;;  %v1343_v12 = vld [vmem:[#allocation2] sm:$0xff]   ;;  %v1349_v26 = vld [vmem:[#allocation2 + $0x8] sm:$0xff]  }
  0x5e   :  { %944 = vmatprep.mubr.msk.bf16.mxu1 %vm283_vm0, %v1343_v12  ;;  %v1058_v25 = vld [vmem:[#allocation8] sm:$0xff]   ;;  %v1351_v27 = vld [vmem:[#allocation2 + $0x10] sm:$0xff]   ;;  %v1059_v28 = vld [vmem:[#allocation8 + $0x8] sm:$0xff]   ;;  %p1191_p1 = por %p1190_p0, %p1189_p13 }
  0x5f   :  { %915 = vmatpush3.bf16.msra.mxu0 %v1043_v1  ;;  %v1060_v29 = vld [vmem:[#allocation8 + $0x10] sm:$0xff]   ;;  %v1357_v30 = vld [vmem:[#allocation2 + $0x18] sm:$0xff]   ;;  %v1062_v32 = vld [vmem:[#allocation8 + $0x20] sm:$0xff]  }
  0x60   :  { %916 = vmatprep.subr.bf16.mxu0 %v1044_v2  ;;  %v1061_v31 = vld [vmem:[#allocation8 + $0x18] sm:$0xff]   ;;  %v1063_v33 = vld [vmem:[#allocation8 + $0x28] sm:$0xff]   ;;  %v1064_v34 = vld [vmem:[#allocation8 + $0x30] sm:$0xff]   ;;  %p1192_p2 = pnand %p1191_p1, %p1185_p12 }
  0x61   :  { %v1065_v35 = vld [vmem:[#allocation8 + $0x38] sm:$0xff]   ;;  %v1066_v4 = vld [vmem:[#allocation10] sm:$0xff]  }
  0x63   :  { %917 = vmatpush3.bf16.msra.mxu0 %v1044_v2 }
  0x64   :  { %918 = vmatprep.subr.bf16.mxu0 %v1045_v3 }
  0x67   :  { %919 = vmatpush3.bf16.msra.mxu0 %v1045_v3 }
  0x68   :  { %920 = vmatprep.subr.bf16.mxu0 %v1046_v5 }
  0x6b   :  { %921 = vmatpush3.bf16.msra.mxu0 %v1046_v5  ;;  %v1067_v5 = vld [vmem:[#allocation10 + $0x8] sm:$0xff]  }
  0x6c   :  { %922 = vmatprep.subr.bf16.mxu0 %v1047_v6 }
  0x6f   :  { %923 = vmatpush3.bf16.msra.mxu0 %v1047_v6  ;;  %v1068_v6 = vld [vmem:[#allocation10 + $0x10] sm:$0xff]  }
  0x70   :  { %924 = vmatprep.subr.bf16.mxu0 %v1048_v7 }
  0x73   :  { %925 = vmatpush3.bf16.msra.mxu0 %v1048_v7  ;;  %v1069_v7 = vld [vmem:[#allocation10 + $0x18] sm:$0xff]  }
  0x74   :  { %926 = vmatprep.subr.bf16.mxu0 %v1049_v8 }
  0x77   :  { %927 = vmatpush3.bf16.msra.mxu0 %v1049_v8  ;;  %v1070_v8 = vld [vmem:[#allocation10 + $0x20] sm:$0xff]  }
  0x7a   :  { %929 = vmatmul.mubr.bf16.vlgmr.msra.gmra.mrb[0].mxu0 %v1051_v9  ;;  %v1071_v9 = vld [vmem:[#allocation10 + $0x28] sm:$0xff]  }
  0x7b   :  { %932 = vmatprep.mubr.bf16.mxu0 %v1052_v10  ;;  %v1072_v10 = vld [vmem:[#allocation10 + $0x30] sm:$0xff]  }
  0x82   :  { %933 = vmatmul.mubr.bf16.gmra.mrb[4].mxu0 %v1053_v11  ;;  %v1073_v11 = vld [vmem:[#allocation10 + $0x38] sm:$0xff]  }
  0x83   :  { %984 = vmatprep.mubr.msk.bf16.mxu0 %vm283_vm0, %v1343_v12 }
 0x14d   :  { %v930_v13 = vpop.f32.mrb[0].mxu0 }
 0x14e   :  { %v228_v14 = vpop.f32.mrb[1].mxu0 }
 0x14f   :  { %v931_v15 = vpop.f32.mrb[2].mxu0 }
 0x150   :  { %v260_v16 = vpack.c.bf16 %v931_v15, %v930_v13  ;;  %v231_v17 = vpop.f32.mrb[3].mxu0 }
 0x151   :  { %v259_v18 = vpack.c.bf16 %v231_v17, %v228_v14 }
 0x153   :  { %936 = vmatprep.subr.bf16.mxu1 %v259_v18 }
 0x154   :  { %937 = vmatpush3.bf16.msra.mxu1 %v259_v18 }
 0x155   :  { %v934_v19 = vpop.f32.mrb[4].mxu0  ;;  %938 = vmatprep.subr.bf16.mxu1 %v260_v16 }
 0x156   :  { %v244_v20 = vpop.f32.mrb[5].mxu0 }
 0x157   :  { %v935_v21 = vpop.f32.mrb[6].mxu0 }
 0x158   :  { %v262_v22 = vpack.c.bf16 %v935_v21, %v934_v19  ;;  %v247_v23 = vpop.f32.mrb[7].mxu0  ;;  %939 = vmatpush3.bf16.msra.mxu1 %v260_v16 }
 0x159   :  { %v261_v24 = vpack.c.bf16 %v247_v23, %v244_v20 }
 0x15b   :  { %940 = vmatprep.subr.bf16.mxu1 %v261_v24 }
 0x15c   :  { %941 = vmatpush3.bf16.msra.mxu1 %v261_v24 }
 0x15d   :  { %942 = vmatprep.subr.bf16.mxu1 %v262_v22 }
 0x160   :  { %943 = vmatpush3.bf16.msra.mxu1 %v262_v22 }
 0x161   :  { %952 = vmatprep.subr.bf16.mxu1 %v1058_v25 }
 0x163   :  { %945 = vmatmul.mubr.msk.bf16.vlgmr.msra.gmra.mrb[0].mxu1 %vm283_vm0, %v1349_v26 }
 0x164   :  { %948 = vmatprep.mubr.msk.bf16.mxu1 %vm283_vm0, %v1351_v27  ;;  %953 = vmatpush3.bf16.msra.mxu1 %v1058_v25 }
 0x165   :  { %954 = vmatprep.subr.bf16.mxu1 %v1059_v28 }
 0x168   :  { %955 = vmatpush3.bf16.msra.mxu1 %v1059_v28 }
 0x169   :  { %956 = vmatprep.subr.bf16.mxu1 %v1060_v29 }
 0x16b   :  { %949 = vmatmul.mubr.msk.bf16.gmra.mrb[4].mxu1 %vm283_vm0, %v1357_v30 }
 0x16c   :  { %957 = vmatpush3.bf16.msra.mxu1 %v1060_v29 }
 0x16d   :  { %958 = vmatprep.subr.bf16.mxu1 %v1061_v31 }
 0x170   :  { %959 = vmatpush3.bf16.msra.mxu1 %v1061_v31 }
 0x171   :  { %960 = vmatprep.subr.bf16.mxu1 %v1062_v32 }
 0x174   :  { %961 = vmatpush3.bf16.msra.mxu1 %v1062_v32 }
 0x175   :  { %962 = vmatprep.subr.bf16.mxu1 %v1063_v33 }
 0x178   :  { %963 = vmatpush3.bf16.msra.mxu1 %v1063_v33 }
 0x179   :  { %964 = vmatprep.subr.bf16.mxu1 %v1064_v34 }
 0x17c   :  { %965 = vmatpush3.bf16.msra.mxu1 %v1064_v34 }
 0x17d   :  { %966 = vmatprep.subr.bf16.mxu1 %v1065_v35 }
 0x180   :  { %967 = vmatpush3.bf16.msra.mxu1 %v1065_v35 }
 0x236   :  { %v946_v36 = vpop.f32.mrb[0].mxu1 }
 0x237   :  { %v330_v37 = vpop.f32.mrb[1].mxu1  ;;  %v363_v39 = vmax.f32 %v946_v36, 0.0 }
 0x238   :  { %v947_v38 = vpop.f32.mrb[2].mxu1  ;;  %v361_v42 = vmax.f32 %v330_v37, 0.0 }
 0x239   :  { %v364_v40 = vmax.f32 %v947_v38, 0.0  ;;  %v333_v41 = vpop.f32.mrb[3].mxu1 }
 0x23a   :  { %v362_v43 = vmax.f32 %v333_v41, 0.0 }
 0x23b   :  { %v370_v44 = vpack.c.bf16 %v364_v40, %v363_v39 }
 0x23c   :  { %v369_v45 = vpack.c.bf16 %v362_v43, %v361_v42 }
 0x23e   :  { %v950_v46 = vpop.f32.mrb[4].mxu1  ;;  %968 = vmatprep.mubr.bf16.mxu1 %v369_v45 }
 0x23f   :  { %v346_v47 = vpop.f32.mrb[5].mxu1  ;;  %969 = vmatmul.mubr.bf16.vlgmr.msra.gmra.mrb[8].mxu1 %v370_v44  ;;  %v367_v49 = vmax.f32 %v950_v46, 0.0 }
 0x240   :  { %v951_v48 = vpop.f32.mrb[6].mxu1  ;;  %v365_v52 = vmax.f32 %v346_v47, 0.0 }
 0x241   :  { %v368_v50 = vmax.f32 %v951_v48, 0.0  ;;  %v349_v51 = vpop.f32.mrb[7].mxu1 }
 0x242   :  { %v366_v53 = vmax.f32 %v349_v51, 0.0 }
 0x243   :  { %v372_v54 = vpack.c.bf16 %v368_v50, %v367_v49 }
 0x244   :  { %v371_v55 = vpack.c.bf16 %v366_v53, %v365_v52 }
 0x246   :  { %972 = vmatprep.mubr.bf16.mxu1 %v371_v55 }
 0x247   :  { %973 = vmatmul.mubr.bf16.gmra.mrb[12].mxu1 %v372_v54 }
 0x248   :  { %1024 = vmatprep.mubr.msk.bf16.mxu1 %vm283_vm0, %v1343_v12 }
 0x312   :  { %v970_v56 = vpop.f32.mrb[8].mxu1 }
 0x313   :  { %v471_v57 = vpop.f32.mrb[9].mxu1 }
 0x314   :  { %v971_v58 = vpop.f32.mrb[10].mxu1 }
 0x315   :  { %v503_v59 = vpack.c.bf16 %v971_v58, %v970_v56  ;;  %v474_v60 = vpop.f32.mrb[11].mxu1 }
 0x316   :  { %v502_v61 = vpack.c.bf16 %v474_v60, %v471_v57 }
 0x318   :  { %976 = vmatprep.subr.bf16.mxu0 %v502_v61 }
 0x319   :  { %977 = vmatpush3.bf16.msra.mxu0 %v502_v61 }
 0x31a   :  { %v974_v62 = vpop.f32.mrb[12].mxu1  ;;  %978 = vmatprep.subr.bf16.mxu0 %v503_v59 }
 0x31b   :  { %v487_v63 = vpop.f32.mrb[13].mxu1 }
 0x31c   :  { %v975_v0 = vpop.f32.mrb[14].mxu1 }
 0x31d   :  { %v505_v1 = vpack.c.bf16 %v975_v0, %v974_v62  ;;  %v490_v2 = vpop.f32.mrb[15].mxu1  ;;  %979 = vmatpush3.bf16.msra.mxu0 %v503_v59 }
 0x31e   :  { %v504_v3 = vpack.c.bf16 %v490_v2, %v487_v63 }
 0x320   :  { %980 = vmatprep.subr.bf16.mxu0 %v504_v3 }
 0x321   :  { %981 = vmatpush3.bf16.msra.mxu0 %v504_v3 }
 0x322   :  { %982 = vmatprep.subr.bf16.mxu0 %v505_v1 }
 0x325   :  { %983 = vmatpush3.bf16.msra.mxu0 %v505_v1 }
 0x326   :  { %992 = vmatprep.subr.bf16.mxu0 %v1066_v4 }
 0x328   :  { %985 = vmatmul.mubr.msk.bf16.vlgmr.msra.gmra.mrb[8].mxu0 %vm283_vm0, %v1349_v26 }
 0x329   :  { %988 = vmatprep.mubr.msk.bf16.mxu0 %vm283_vm0, %v1351_v27  ;;  %993 = vmatpush3.bf16.msra.mxu0 %v1066_v4 }
 0x32a   :  { %994 = vmatprep.subr.bf16.mxu0 %v1067_v5 }
 0x32d   :  { %995 = vmatpush3.bf16.msra.mxu0 %v1067_v5 }
 0x32e   :  { %996 = vmatprep.subr.bf16.mxu0 %v1068_v6 }
 0x330   :  { %989 = vmatmul.mubr.msk.bf16.gmra.mrb[12].mxu0 %vm283_vm0, %v1357_v30 }
 0x331   :  { %997 = vmatpush3.bf16.msra.mxu0 %v1068_v6 }
 0x332   :  { %998 = vmatprep.subr.bf16.mxu0 %v1069_v7 }
 0x335   :  { %999 = vmatpush3.bf16.msra.mxu0 %v1069_v7 }
 0x336   :  { %1000 = vmatprep.subr.bf16.mxu0 %v1070_v8 }
 0x339   :  { %1001 = vmatpush3.bf16.msra.mxu0 %v1070_v8 }
 0x33a   :  { %1002 = vmatprep.subr.bf16.mxu0 %v1071_v9 }
 0x33d   :  { %1003 = vmatpush3.bf16.msra.mxu0 %v1071_v9 }
 0x33e   :  { %1004 = vmatprep.subr.bf16.mxu0 %v1072_v10 }
 0x341   :  { %1005 = vmatpush3.bf16.msra.mxu0 %v1072_v10 }
 0x342   :  { %1006 = vmatprep.subr.bf16.mxu0 %v1073_v11 }
 0x345   :  { %1007 = vmatpush3.bf16.msra.mxu0 %v1073_v11 }
 0x3fb   :  { %v986_v12 = vpop.f32.mrb[8].mxu0 }
 0x3fc   :  { %v540_v13 = vpop.f32.mrb[9].mxu0  ;;  %v573_v15 = vmax.f32 %v986_v12, 0.0 }
 0x3fd   :  { %v987_v14 = vpop.f32.mrb[10].mxu0  ;;  %v571_v18 = vmax.f32 %v540_v13, 0.0 }
 0x3fe   :  { %v574_v16 = vmax.f32 %v987_v14, 0.0  ;;  %v543_v17 = vpop.f32.mrb[11].mxu0 }
 0x3ff   :  { %v572_v19 = vmax.f32 %v543_v17, 0.0 }
 0x400   :  { %v580_v20 = vpack.c.bf16 %v574_v16, %v573_v15 }
 0x401   :  { %v579_v21 = vpack.c.bf16 %v572_v19, %v571_v18 }
 0x403   :  { %v990_v22 = vpop.f32.mrb[12].mxu0  ;;  %1008 = vmatprep.mubr.bf16.mxu0 %v579_v21 }
 0x404   :  { %v556_v23 = vpop.f32.mrb[13].mxu0  ;;  %1009 = vmatmul.mubr.bf16.vlgmr.msra.gmra.mrb[16].mxu0 %v580_v20  ;;  %v577_v25 = vmax.f32 %v990_v22, 0.0 }
 0x405   :  { %v991_v24 = vpop.f32.mrb[14].mxu0  ;;  %v575_v31 = vmax.f32 %v556_v23, 0.0 }
 0x406   :  { %v578_v28 = vmax.f32 %v991_v24, 0.0  ;;  %v559_v29 = vpop.f32.mrb[15].mxu0 }
 0x407   :  { %v576_v32 = vmax.f32 %v559_v29, 0.0 }
 0x408   :  { %v582_v33 = vpack.c.bf16 %v578_v28, %v577_v25 }
 0x409   :  { %v581_v34 = vpack.c.bf16 %v576_v32, %v575_v31 }
 0x40b   :  { %1012 = vmatprep.mubr.bf16.mxu0 %v581_v34 }
 0x40c   :  { %1013 = vmatmul.mubr.bf16.gmra.mrb[20].mxu0 %v582_v33 }
 0x4d7   :  { %v1010_v35 = vpop.f32.mrb[16].mxu0 }
 0x4d8   :  { %v681_v36 = vpop.f32.mrb[17].mxu0 }
 0x4d9   :  { %v1011_v37 = vpop.f32.mrb[18].mxu0 }
 0x4da   :  { %v713_v38 = vpack.c.bf16 %v1011_v37, %v1010_v35  ;;  %v684_v39 = vpop.f32.mrb[19].mxu0 }
 0x4db   :  { %v712_v40 = vpack.c.bf16 %v684_v39, %v681_v36 }
 0x4dd   :  { %1016 = vmatprep.subr.bf16.mxu1 %v712_v40 }
 0x4de   :  { %1017 = vmatpush3.bf16.msra.mxu1 %v712_v40 }
 0x4df   :  { %v1014_v41 = vpop.f32.mrb[20].mxu0  ;;  %1018 = vmatprep.subr.bf16.mxu1 %v713_v38 }
 0x4e0   :  { %v697_v42 = vpop.f32.mrb[21].mxu0 }
 0x4e1   :  { %v1015_v43 = vpop.f32.mrb[22].mxu0 }
 0x4e2   :  { %v715_v44 = vpack.c.bf16 %v1015_v43, %v1014_v41  ;;  %v700_v45 = vpop.f32.mrb[23].mxu0  ;;  %1019 = vmatpush3.bf16.msra.mxu1 %v713_v38 }
 0x4e3   :  { %v714_v46 = vpack.c.bf16 %v700_v45, %v697_v42 }
 0x4e5   :  { %1020 = vmatprep.subr.bf16.mxu1 %v714_v46 }
 0x4e6   :  { %1021 = vmatpush3.bf16.msra.mxu1 %v714_v46 }
 0x4e7   :  { %1022 = vmatprep.subr.bf16.mxu1 %v715_v44 }
 0x4ea   :  { %1023 = vmatpush3.bf16.msra.mxu1 %v715_v44 }
 0x4ed   :  { %1025 = vmatmul.mubr.msk.bf16.vlgmr.msra.gmra.mrb[16].mxu1 %vm283_vm0, %v1349_v26 }
 0x4ee   :  { %1028 = vmatprep.mubr.msk.bf16.mxu1 %vm283_vm0, %v1351_v27 }
 0x4f5   :  { %1029 = vmatmul.mubr.msk.bf16.gmra.mrb[20].mxu1 %vm283_vm0, %v1357_v30 }
 0x5c0   :  { %v1026_v47 = vpop.f32.mrb[16].mxu1 }
 0x5c1   :  { %783 = vst [vmem:[#allocation11 + $0x10] sm:$0xff] %v1026_v47  ;;  %v750_v48 = vpop.f32.mrb[17].mxu1 }
 0x5c2   :  { %781 = vst [vmem:[#allocation11] sm:$0xff] %v750_v48  ;;  %v1027_v49 = vpop.f32.mrb[18].mxu1 }
 0x5c3   :  { %784 = vst [vmem:[#allocation11 + $0x18] sm:$0xff] %v1027_v49  ;;  %v753_v50 = vpop.f32.mrb[19].mxu1 }
 0x5c4   :  { %782 = vst [vmem:[#allocation11 + $0x8] sm:$0xff] %v753_v50 }
 0x5c8   :  { %v1030_v51 = vpop.f32.mrb[20].mxu1 }
 0x5c9   :  { %787 = vst [vmem:[#allocation11 + $0x30] sm:$0xff] %v1030_v51  ;;  %v766_v52 = vpop.f32.mrb[21].mxu1 }
 0x5ca   :  { %785 = vst [vmem:[#allocation11 + $0x20] sm:$0xff] %v766_v52  ;;  %v1031_v26 = vpop.f32.mrb[22].mxu1 }
 0x5cb   :  { %788 = vst [vmem:[#allocation11 + $0x38] sm:$0xff] %v1031_v26  ;;  %v769_v27 = vpop.f32.mrb[23].mxu1 }
 0x5cc   :  { %786 = vst [vmem:[#allocation11 + $0x28] sm:$0xff] %v769_v27 }
 0x5cd   :  { %1195 = shalt.err (!%p1192_p2)
}
 0x5ce   :  { %s1196_s3 = scalar_lea.hbm %s1392_s5, 1024 }
 0x5cf   :  { %p1197_p3 = scmp.ne.s32.totalorder %s1392_s5, %s1196_s3  ;;  %p1200_p4 = scmp.lt.u32.totalorder %s1196_s3, %s1392_s5 }
 0x5d1   :  { %p1202_p5 = pnand %p1200_p4, %p1197_p3 }
 0x5d3   :  { %1205 = shalt.err (!%p1202_p5)
}
 0x5d4   :  { %s1222_s10 = smov 128   ;;  %s1223_s11 = smov 8  }
 0x5d5   :  { %800 = dma.vmem_to_hbm [thread:$0]  %s795_s30, 1024, %s1392_s5, [#allocation4], %s1222_s10, %s1222_s10, %s1223_s11  }
 0x5d6   :  { %1212 = dma.done.wait [#allocation4], 1024  }
 0x5d7   :  { %1213 = vsyncadd [#allocation4], 4294966272 }
 0x5d8   :  { %804 = vsyncpa [#allocation3], 1 }
 0x5d9   :  { %805 = vsyncpa [#allocation6], 1 }
 0x5da   :  { %806 = vsyncpa [#allocation9], 1 }
 0x5db   :  { %807 = vsyncpa [#allocation4], 1 }

</bundles_post_ra>
